<compile_context>
chip_gen: v7x
topology: tpu7x:2x2x1
jax: 0.10.0
libtpu: 0.0.40
codegen_flags: <defaults>
</compile_context>

<pallas_src>
import functools

import jax
import jax.numpy as jnp
from jax.experimental import pallas as pl
from jax.experimental.pallas import tpu as pltpu


_SELU_ALPHA = 1.6732632423543772848170429916717
_SELU_LAMBDA = 1.0507009873554804934193349852946


def _selu(v):
    # matches torch.nn.SELU; exp() only on the non-positive part so the
    # discarded branch never overflows to inf.
    return _SELU_LAMBDA * jnp.where(
        v > 0.0, v, _SELU_ALPHA * (jnp.exp(jnp.minimum(v, 0.0)) - 1.0))


def _round_up(a, b):
    return (a + b - 1) // b * b


# ----------------------------- Pallas kernel -------------------------------
def _dsm_kernel(*refs, n_emb, inv_temp):
    # refs = (x, emb_w[0..n_emb-1], w_heads, packed_params, out)
    x_ref = refs[0]
    emb_refs = refs[1:1 + n_emb]
    wh_ref = refs[1 + n_emb]
    pp_ref = refs[2 + n_emb]
    out_ref = refs[3 + n_emb]

    # --- embedding: Linear(no bias) + ReLU6 per layer ---
    h = x_ref[...]                                  # bf16 (TILE_B, p_in)
    for w_ref in emb_refs:
        h = jnp.dot(h, w_ref[...], preferred_element_type=jnp.float32)
        h = jnp.clip(h, 0.0, 6.0).astype(jnp.bfloat16)   # ReLU6, back to bf16

    # --- fused heads: [shapeg | scaleg | gate | pad] in one MXU pass ---
    heads = jnp.dot(h, wh_ref[...], preferred_element_type=jnp.float32)

    pp = pp_ref[...]                                # (3, head_pad) f32
    bias = pp[0:1, :]                               # [shapeg_b | scaleg_b | 0 | 0]
    post = pp[1:2, :]                               # [shape_p  | scale_p  | 0 | 0]
    use_selu = pp[2:3, :] > 0.5                     # [1 ... 1  | 0 ... 0]

    heads = heads + bias
    # lane-dense select: SELU(+post) on shape/scale lanes, *1/temp elsewhere
    out_ref[...] = jnp.where(use_selu, _selu(heads) + post, heads * inv_temp)


# ------------------------------- Wrapper ------------------------------------
def pack_params(params, *, k, risks, inputdim=None):
    """Pack f32 parameters into the kernel-friendly (bf16, 128-lane padded,
    fused-head) layout."""
    kr = k * risks
    emb_ws_f32 = params["emb_ws"]
    if inputdim is None:
        inputdim = (int(emb_ws_f32[0].shape[0]) if emb_ws_f32
                    else int(params["shapeg_w"].shape[0]))

    dims = [inputdim] + [int(w.shape[1]) for w in emb_ws_f32]
    pdims = [_round_up(max(d, 1), 128) for d in dims]       # lane-dense dims
    head_w = 3 * kr
    head_pad = _round_up(head_w, 128)

    emb_ws = []
    for i, w in enumerate(emb_ws_f32):
        wp = jnp.zeros((pdims[i], pdims[i + 1]), jnp.float32)
        wp = wp.at[:dims[i], :dims[i + 1]].set(w)
        emb_ws.append(wp.astype(jnp.bfloat16))

    lastdim, p_last = dims[-1], pdims[-1]
    wh = jnp.concatenate(
        [params["shapeg_w"], params["scaleg_w"], params["gate_w"]], axis=1)
    wh_p = jnp.zeros((p_last, head_pad), jnp.float32)
    wh_p = wh_p.at[:lastdim, :head_w].set(wh)
    w_heads = wh_p.astype(jnp.bfloat16)                      # (p_last, head_pad)

    zeros = jnp.zeros((1, kr), jnp.float32)
    bias = jnp.concatenate([params["shapeg_b"], params["scaleg_b"], zeros], 1)
    post = jnp.concatenate([params["shape_p"], params["scale_p"], zeros], 1)
    mask = jnp.concatenate(
        [jnp.ones((1, 2 * kr), jnp.float32), jnp.zeros((1, kr), jnp.float32)], 1)
    pp_core = jnp.concatenate([bias, post, mask], axis=0)    # (3, 3*kr)
    pp = jnp.zeros((3, head_pad), jnp.float32)
    pp = pp.at[:, :head_w].set(pp_core)   # padded lanes keep mask=0 (gate path)

    return {"emb_ws": emb_ws, "w_heads": w_heads, "pp": pp,
            "inputdim": inputdim, "in_pad": pdims[0],
            "head_w": head_w, "head_pad": head_pad}


def dsm_forward(packed, x, *, k, risks, temp, tile_b=2048):
    """DSM forward in one Pallas call; returns [(shape, scale, gate)] per risk,
    each (batch, k)."""
    batch, inputdim = x.shape
    assert inputdim == packed["inputdim"]
    kr = k * risks
    emb_ws = packed["emb_ws"]
    w_heads = packed["w_heads"]
    pp = packed["pp"]
    in_pad = packed["in_pad"]
    head_w = packed["head_w"]
    head_pad = packed["head_pad"]
    n_emb = len(emb_ws)

    x = x.astype(jnp.bfloat16)
    if in_pad != inputdim:                       # lane-pad features (zeros)
        x = jnp.pad(x, ((0, 0), (0, in_pad - inputdim)))

    # --- batch tiling: multiple of 16 (bf16 sublane packing) -----------------
    mt = 16
    pb = _round_up(batch, mt)
    tb = _round_up(max(mt, min(tile_b, pb)), mt)
    # guarantee >= 2 grid steps when batch allows, so v7x's 2nd TC has work
    if pb >= 2 * mt and tb > pl.cdiv(pb, 2):
        tb = _round_up(pl.cdiv(pb, 2), mt)
    padded = _round_up(pb, tb)
    if padded != batch:
        x = jnp.pad(x, ((0, padded - batch), (0, 0)))
    grid = (padded // tb,)

    # activation tile marches down the batch; weights stay VMEM-resident and
    # single-buffered (their index map is constant -> 2nd buffer is waste).
    in_specs = [pl.BlockSpec((tb, in_pad), lambda i: (i, 0))]
    inputs = [x]
    for w in emb_ws:
        in_specs.append(pl.BlockSpec(w.shape, lambda i: (0, 0),
                                     pipeline_mode=pl.Buffered(1)))
        inputs.append(w)
    in_specs.append(pl.BlockSpec(w_heads.shape, lambda i: (0, 0),
                                 pipeline_mode=pl.Buffered(1)))
    inputs.append(w_heads)
    in_specs.append(pl.BlockSpec(pp.shape, lambda i: (0, 0),
                                 pipeline_mode=pl.Buffered(1)))
    inputs.append(pp)

    out_spec = pl.BlockSpec((tb, head_pad), lambda i: (i, 0))
    out_sds = jax.ShapeDtypeStruct((padded, head_pad), jnp.float32)

    # --- VMEM budget ----------------------------------------------------------
    widths = [in_pad] + [int(w.shape[1]) for w in emb_ws] + [head_pad]
    vmem = 2 * tb * in_pad * 2 + 2 * tb * head_pad * 4        # pipelined IO tiles
    vmem += sum(int(w.size) * 2 for w in emb_ws)              # resident weights
    vmem += int(w_heads.size) * 2 + int(pp.size) * 4
    vmem += 4 * tb * max(widths) * 4                          # f32 intermediates
    hard_cap = 32 << 20                                       # safe on v7x (64 MiB phys)
    try:
        if int(pltpu.get_tpu_info().vmem_capacity_bytes) >= (100 << 20):
            hard_cap = 96 << 20                               # v5e / v6e (128 MiB phys)
    except Exception:
        pass
    vmem_limit = int(min(max(2 * vmem, 16 << 20), hard_cap))

    out = pl.pallas_call(
        functools.partial(_dsm_kernel, n_emb=n_emb, inv_temp=float(1.0 / temp)),
        out_shape=out_sds,
        grid=grid,
        in_specs=in_specs,
        out_specs=out_spec,
        compiler_params=pltpu.CompilerParams(
            dimension_semantics=("parallel",),
            vmem_limit_bytes=vmem_limit),
    )(*inputs)

    out = out[:batch, :head_w]
    shape = out[:, :kr]
    scale = out[:, kr:2 * kr]
    gate = out[:, 2 * kr:3 * kr]
    outcomes = []
    for i in range(risks):
        sl = slice(i * k, (i + 1) * k)
        outcomes.append((shape[:, sl], scale[:, sl], gate[:, sl]))
    return outcomes


# ------------------------- Deterministic parameters --------------------------
def init_params(key, inputdim, layers, k, risks):
    kr = k * risks
    lastdim = layers[-1] if len(layers) > 0 else inputdim
    keys = jax.random.split(key, len(layers) + 5)

    def lin_w(kk, fan_in, fan_out):
        bound = 1.0 / jnp.sqrt(float(fan_in))
        return jax.random.uniform(kk, (fan_in, fan_out), jnp.float32,
                                  -bound, bound)

    def lin_b(kk, fan_in, fan_out):
        bound = 1.0 / jnp.sqrt(float(fan_in))
        return jax.random.uniform(kk, (1, fan_out), jnp.float32, -bound, bound)

    emb_ws = []
    prev = inputdim
    for li, hid in enumerate(layers):
        emb_ws.append(lin_w(keys[li], prev, hid))
        prev = hid

    o = len(layers)
    params = {
        "emb_ws": emb_ws,
        "gate_w": lin_w(keys[o + 0], lastdim, kr),
        "scaleg_w": lin_w(keys[o + 1], lastdim, kr),
        "scaleg_b": lin_b(keys[o + 2], lastdim, kr),
        "shapeg_w": lin_w(keys[o + 3], lastdim, kr),
        "shapeg_b": lin_b(keys[o + 4], lastdim, kr),
        # nn.Parameter(-torch.ones(k*risks))
        "shape_p": -jnp.ones((1, kr), jnp.float32),
        "scale_p": -jnp.ones((1, kr), jnp.float32),
    }
    return params


# ------------------------------ Pure-JAX ref ---------------------------------
def dsm_reference(params, x, *, k, risks, temp):
    """PyTorch-forward semantics with the same bf16-weight / f32-accumulate
    numerics as the kernel (un-fused heads, so it also checks the packing)."""
    h = x.astype(jnp.bfloat16)
    for w in params["emb_ws"]:
        h = jnp.dot(h, w.astype(jnp.bfloat16),
                    preferred_element_type=jnp.float32)
        h = jnp.clip(h, 0.0, 6.0).astype(jnp.bfloat16)
    shapeg = jnp.dot(h, params["shapeg_w"].astype(jnp.bfloat16),
                     preferred_element_type=jnp.float32) + params["shapeg_b"]
    scaleg = jnp.dot(h, params["scaleg_w"].astype(jnp.bfloat16),
                     preferred_element_type=jnp.float32) + params["scaleg_b"]
    gate = jnp.dot(h, params["gate_w"].astype(jnp.bfloat16),
                   preferred_element_type=jnp.float32) / float(temp)
    shape = _selu(shapeg) + params["shape_p"]
    scale = _selu(scaleg) + params["scale_p"]
    outcomes = []
    for i in range(risks):
        sl = slice(i * k, (i + 1) * k)
        outcomes.append((shape[:, sl], scale[:, sl], gate[:, sl]))
    return outcomes


# ---------------------------------- Main -------------------------------------
if __name__ == "__main__":
    # Small config consistent with the module's __init__
    batch = 48
    inputdim = 16
    layers = [32, 32]
    k = 4
    risks = 2
    temp = 1000.0
    # dropout_prob / discount are unused in the PyTorch forward -> not modeled.

    key = jax.random.PRNGKey(0)
    pkey, xkey = jax.random.split(key)
    params = init_params(pkey, inputdim, layers, k, risks)
    x = jax.random.normal(xkey, (batch, inputdim), jnp.float32)

    packed = pack_params(params, k=k, risks=risks, inputdim=inputdim)
    # Default tile_b (large) — the wrapper clamps it and splits the batch into
    # >= 2 grid steps, exercising the pipelined, megacore-friendly path.
    outcomes = dsm_forward(packed, x, k=k, risks=risks, temp=temp)
    outcomes = jax.block_until_ready(outcomes)

    # correctness check against pure-JAX reference of the PyTorch semantics
    ref = dsm_reference(params, x, k=k, risks=risks, temp=temp)
    for (s_k, sc_k, g_k), (s_r, sc_r, g_r) in zip(outcomes, ref):
        assert s_k.shape == (batch, k) and sc_k.shape == (batch, k) \
            and g_k.shape == (batch, k)
        assert jnp.allclose(s_k, s_r, atol=1e-4, rtol=1e-4)
        assert jnp.allclose(sc_k, sc_r, atol=1e-4, rtol=1e-4)
        assert jnp.allclose(g_k, g_r, atol=1e-4, rtol=1e-4)

    print("KERNEL_OK")
</pallas_src>

<mosaic_0001>
module attributes {stable_mosaic.version = 11 : i64} {
  func.func @_dsm_kernel(%arg0: i32, %arg1: memref<32x128xbf16, #tpu.memory_space<vmem>>, %arg2: memref<128x128xbf16, #tpu.memory_space<vmem>>, %arg3: memref<128x128xbf16, #tpu.memory_space<vmem>>, %arg4: memref<128x128xbf16, #tpu.memory_space<vmem>>, %arg5: memref<3x128xf32, #tpu.memory_space<vmem>>, %arg6: memref<32x128xf32, #tpu.memory_space<vmem>>) attributes {dimension_semantics = [#tpu.dimension_semantics<parallel>], iteration_bounds = array<i64: 2>, scalar_prefetch = 0 : i64, scratch_operands = 0 : i64, tpu.core_type = #tpu.core_type<tc>, window_params = [{transform_indices = @transform_0, window_bounds = array<i64: 32, 128>}, {pipeline_mode = #tpu.pipeline_mode<synchronous>, transform_indices = @transform_1, window_bounds = array<i64: 128, 128>}, {pipeline_mode = #tpu.pipeline_mode<synchronous>, transform_indices = @transform_2, window_bounds = array<i64: 128, 128>}, {pipeline_mode = #tpu.pipeline_mode<synchronous>, transform_indices = @transform_3, window_bounds = array<i64: 128, 128>}, {pipeline_mode = #tpu.pipeline_mode<synchronous>, transform_indices = @transform_4, window_bounds = array<i64: 3, 128>}, {transform_indices = @transform_5, window_bounds = array<i64: 32, 128>}]} {
    %c0 = arith.constant 0 : index
    %c0_0 = arith.constant 0 : index
    %0 = vector.load %arg1[%c0, %c0_0] : memref<32x128xbf16, #tpu.memory_space<vmem>>, vector<32x128xbf16>
    %c0_1 = arith.constant 0 : index
    %c0_2 = arith.constant 0 : index
    %1 = vector.load %arg2[%c0_1, %c0_2] : memref<128x128xbf16, #tpu.memory_space<vmem>>, vector<128x128xbf16>
    %cst = arith.constant dense<0.000000e+00> : vector<32x128xf32>
    %2 = tpu.matmul %0, %1, %cst {dimension_numbers = #tpu.dot_dimension_numbers<[1], [0], [0], [1], [0, 0, 1, 1], [], []>} : vector<32x128xbf16>, vector<128x128xbf16>, vector<32x128xf32> -> vector<32x128xf32>
    %cst_3 = arith.constant 0.000000e+00 : f32
    %cst_4 = arith.constant 6.000000e+00 : f32
    %3 = vector.broadcast %cst_3 : f32 to vector<32x128xf32>
    %4 = arith.maximumf %3, %2 : vector<32x128xf32>
    %5 = vector.broadcast %cst_4 : f32 to vector<32x128xf32>
    %6 = arith.minimumf %5, %4 : vector<32x128xf32>
    %7 = arith.truncf %6 : vector<32x128xf32> to vector<32x128xbf16>
    %c0_5 = arith.constant 0 : index
    %c0_6 = arith.constant 0 : index
    %8 = vector.load %arg3[%c0_5, %c0_6] : memref<128x128xbf16, #tpu.memory_space<vmem>>, vector<128x128xbf16>
    %cst_7 = arith.constant dense<0.000000e+00> : vector<32x128xf32>
    %9 = tpu.matmul %7, %8, %cst_7 {dimension_numbers = #tpu.dot_dimension_numbers<[1], [0], [0], [1], [0, 0, 1, 1], [], []>} : vector<32x128xbf16>, vector<128x128xbf16>, vector<32x128xf32> -> vector<32x128xf32>
    %cst_8 = arith.constant 0.000000e+00 : f32
    %cst_9 = arith.constant 6.000000e+00 : f32
    %10 = vector.broadcast %cst_8 : f32 to vector<32x128xf32>
    %11 = arith.maximumf %10, %9 : vector<32x128xf32>
    %12 = vector.broadcast %cst_9 : f32 to vector<32x128xf32>
    %13 = arith.minimumf %12, %11 : vector<32x128xf32>
    %14 = arith.truncf %13 : vector<32x128xf32> to vector<32x128xbf16>
    %c0_10 = arith.constant 0 : index
    %c0_11 = arith.constant 0 : index
    %15 = vector.load %arg4[%c0_10, %c0_11] : memref<128x128xbf16, #tpu.memory_space<vmem>>, vector<128x128xbf16>
    %cst_12 = arith.constant dense<0.000000e+00> : vector<32x128xf32>
    %16 = tpu.matmul %14, %15, %cst_12 {dimension_numbers = #tpu.dot_dimension_numbers<[1], [0], [0], [1], [0, 0, 1, 1], [], []>} : vector<32x128xbf16>, vector<128x128xbf16>, vector<32x128xf32> -> vector<32x128xf32>
    %c0_13 = arith.constant 0 : index
    %c0_14 = arith.constant 0 : index
    %17 = vector.load %arg5[%c0_13, %c0_14] : memref<3x128xf32, #tpu.memory_space<vmem>>, vector<3x128xf32>
    %18 = vector.extract_strided_slice %17 {offsets = [0, 0], sizes = [1, 128], strides = [1, 1]} : vector<3x128xf32> to vector<1x128xf32>
    %19 = vector.extract_strided_slice %17 {offsets = [1, 0], sizes = [1, 128], strides = [1, 1]} : vector<3x128xf32> to vector<1x128xf32>
    %20 = vector.extract_strided_slice %17 {offsets = [2, 0], sizes = [1, 128], strides = [1, 1]} : vector<3x128xf32> to vector<1x128xf32>
    %cst_15 = arith.constant 5.000000e-01 : f32
    %21 = vector.broadcast %cst_15 : f32 to vector<1x128xf32>
    %22 = arith.cmpf ogt, %20, %21 : vector<1x128xf32>
    %23 = vector.broadcast %18 : vector<1x128xf32> to vector<32x128xf32>
    %24 = arith.addf %16, %23 : vector<32x128xf32>
    %cst_16 = arith.constant 0.000000e+00 : f32
    %25 = vector.broadcast %cst_16 : f32 to vector<32x128xf32>
    %26 = arith.cmpf ogt, %24, %25 : vector<32x128xf32>
    %cst_17 = arith.constant 0.000000e+00 : f32
    %27 = vector.broadcast %cst_17 : f32 to vector<32x128xf32>
    %28 = arith.minimumf %24, %27 : vector<32x128xf32>
    %29 = math.exp %28 : vector<32x128xf32>
    %cst_18 = arith.constant 1.000000e+00 : f32
    %30 = vector.broadcast %cst_18 : f32 to vector<32x128xf32>
    %31 = arith.subf %29, %30 : vector<32x128xf32>
    %cst_19 = arith.constant 1.67326319 : f32
    %32 = vector.broadcast %cst_19 : f32 to vector<32x128xf32>
    %33 = arith.mulf %32, %31 : vector<32x128xf32>
    %34 = arith.select %26, %24, %33 : vector<32x128xi1>, vector<32x128xf32>
    %cst_20 = arith.constant 1.05070102 : f32
    %35 = vector.broadcast %cst_20 : f32 to vector<32x128xf32>
    %36 = arith.mulf %35, %34 : vector<32x128xf32>
    %37 = vector.broadcast %19 : vector<1x128xf32> to vector<32x128xf32>
    %38 = arith.addf %36, %37 : vector<32x128xf32>
    %cst_21 = arith.constant 1.000000e-03 : f32
    %39 = vector.broadcast %cst_21 : f32 to vector<32x128xf32>
    %40 = arith.mulf %24, %39 : vector<32x128xf32>
    %41 = vector.shape_cast %22 : vector<1x128xi1> to vector<1x128xi1>
    %42 = vector.broadcast %41 : vector<1x128xi1> to vector<32x128xi1>
    %43 = arith.select %42, %38, %40 : vector<32x128xi1>, vector<32x128xf32>
    %c0_22 = arith.constant 0 : index
    %c0_23 = arith.constant 0 : index
    %44 = vector.load %arg6[%c0_22, %c0_23] : memref<32x128xf32, #tpu.memory_space<vmem>>, vector<32x128xf32>
    tpu.vector_store %arg6[%c0_22, %c0_23], %43 {strides = array<i32>} : memref<32x128xf32, #tpu.memory_space<vmem>>, vector<32x128xf32>,
    return
  }
  func.func @transform_0(%arg0: i32) -> (i32, i32) {
    %c0_i32 = arith.constant 0 : i32
    %c0_i32_0 = arith.constant 0 : i32
    return %arg0, %c0_i32 : i32, i32
  }
  func.func @transform_1(%arg0: i32) -> (i32, i32) {
    %c0_i32 = arith.constant 0 : i32
    %c0_i32_0 = arith.constant 0 : i32
    %c0_i32_1 = arith.constant 0 : i32
    return %c0_i32, %c0_i32_0 : i32, i32
  }
  func.func @transform_2(%arg0: i32) -> (i32, i32) {
    %c0_i32 = arith.constant 0 : i32
    %c0_i32_0 = arith.constant 0 : i32
    %c0_i32_1 = arith.constant 0 : i32
    return %c0_i32, %c0_i32_0 : i32, i32
  }
  func.func @transform_3(%arg0: i32) -> (i32, i32) {
    %c0_i32 = arith.constant 0 : i32
    %c0_i32_0 = arith.constant 0 : i32
    %c0_i32_1 = arith.constant 0 : i32
    return %c0_i32, %c0_i32_0 : i32, i32
  }
  func.func @transform_4(%arg0: i32) -> (i32, i32) {
    %c0_i32 = arith.constant 0 : i32
    %c0_i32_0 = arith.constant 0 : i32
    %c0_i32_1 = arith.constant 0 : i32
    return %c0_i32, %c0_i32_0 : i32, i32
  }
  func.func @transform_5(%arg0: i32) -> (i32, i32) {
    %c0_i32 = arith.constant 0 : i32
    %c0_i32_0 = arith.constant 0 : i32
    return %arg0, %c0_i32 : i32, i32
  }
}

</mosaic_0001>

<bundles_post_ra>
// kernel: tpu_custom_call.1
= control target key start
LH: loop header
LB: loop body
LE: loop exit
PB: predicated region body
PF: predicated region fallthrough
CT: control target
= control target key end

     0   :  { %10 = vsyncpa [#allocation3], 0  ;;  %s1616_s0 = inlined_call_operand.hbm [shape: bf16[64,128], index: 0, kind: input, shape index: {}]   ;;  %s1617_s1 = inlined_call_operand.hbm [shape: bf16[128,128], index: 1, kind: input, shape index: {}]   ;;  %s1618_s2 = inlined_call_operand.hbm [shape: bf16[128,128], index: 2, kind: input, shape index: {}]   ;;  %s1619_s3 = inlined_call_operand.hbm [shape: bf16[128,128], index: 3, kind: input, shape index: {}]   ;;  %s1620_s4 = inlined_call_operand.vmem [shape: f32[3,128], index: 4, kind: input, shape index: {}]   ;;  %s1621_s5 = inlined_call_operand.hbm [shape: f32[64,128], index: 5, kind: output, shape index: {}]  }
   0x1   :  { %12 = vsyncpa [#allocation3 + $0x1], 0 }
   0x2   :  { %13 = vsyncpa [#allocation6], 0 }
   0x3   :  { %14 = vsyncpa [#allocation9], 0 }
   0x4   :  { %15 = vsyncpa [#allocation4], 0 }
   0x5   :  { %17 = vsyncpa [#allocation4 + $0x1], 0  ;;  %s1333_s18 = smov 0   ;;  %s1335_s19 = smov 0  }
   0x6   :  { %s1337_s20 = smov 0   ;;  %s1339_s21 = smov 0  }
   0x7 LB: > { %s1354_s22 = sadd.s32 4294967295, %s1291_s21   ;;  %s845_s23 = sadd.s32 4294967294, %s1291_s21   ;;  %s1291_s21 = sphi %s1339_s21, %s1644_s21   ;;  %s1287_s20 = sphi %s1337_s20, %s1643_s20   ;;  %s1283_s19 = sphi %s1335_s19, %s1642_s19   ;;  %s1279_s18 = sphi %s1333_s18, %s1641_s18  }
   0x8   : > { %p43_p0 = scmp.ne.s32.totalorder %s1283_s19, %s1279_s18  ;;  %p1622_p1 = scmp.eq.s32.totalorder %s1354_s22, 0 }
   0x9   : > { %p157_p3 = scmp.eq.s32.totalorder %s845_s23, 1  ;;  %p846_p5 = scmp.ge.s32.totalorder %s1291_s21, 1 }
   0xa   : > { %p1363_p4 = por %p1622_p1, %p43_p0  ;;  %p164_p7 = scmp.lt.s32.totalorder %s1291_s21, 3 }
   0xb   : > { %p1368_p6 = por %p157_p3, %p43_p0  ;;  %s1293_s27 = smov [#allocation5]  }
   0xc   : > { %s1625_s24 = scalar_select %p1363_p4, 1, 0 }
   0xd   : > { %s1626_s25 = scalar_select %p1368_p6, 1, 0 }
   0xe   : > { %p1373_p8 = pnand %p846_p5, %p164_p7  ;;  %s176_s28 = sshll.u32 %s1293_s27, 4  ;;  %s1377_s28 = int_to_ptr.vmem [resolvable:$true] %s176_s28 }
   0xf   : > { %s1294_s30 = smov [#allocation7]   ;;  %s1295_s7 = smov [#allocation8]  }
  0x10   : > { %s1627_s26 = scalar_select %p1373_p8, 1, 0 }
  0x11   : > { %p1003_p9 = pneg %p1373_p8  ;;  %s189_s6 = sshll.u32 %s1294_s30, 4  ;;  %s1388_s6 = int_to_ptr.vmem [resolvable:$true] %s189_s6 }
  0x12   : > { %s1390_s8 = sshll.u32 %s1295_s7, 4  ;;  %s1103_s11 = scalar_lea.hbm %s1617_s1, 1024  ;;  %s203_s8 = int_to_ptr.vmem [resolvable:$true] %s1390_s8 }
  0x13   : > { %p1384_p11 = pnand %p1003_p9, %p1622_p1  ;;  %p1104_p12 = scmp.ne.s32.totalorder %s1617_s1, %s1103_s11 }
  0x14   : > { %p1110_p5 = scmp.lt.u32.totalorder %s1103_s11, %s1617_s1 }
  0x15   : > { %p1400_p13 = pneg %p1384_p11 }
  0x17   : > { %p1106_p0 = pnand %p1400_p13, %p1104_p12 }
  0x19   : > { %p1107_p3 = pneg %p1106_p0 }
  0x1b   : > { %p1112_p7 = pnand %p1110_p5, %p1107_p3 }
  0x1d   : > { %1115 = shalt.err (!%p1112_p7)
}
  0x1e   : > { %s1116_s17 = scalar_lea.vmem %s1377_s28, 1024  ;;  %p1124_p2 = scmp.lt.s32.totalorder %s1377_s28, %s1377_s28 }
  0x1f   : > { %p1117_p9 = scmp.ne.s32.totalorder %s1377_s28, %s1116_s17  ;;  %p1125_p6 = scmp.lt.s32.totalorder %s1116_s17, %s1116_s17 }
  0x21   : > { %p1119_p10 = pnand %p1117_p9, %p1400_p13  ;;  %p1126_p12 = por %p1125_p6, %p1124_p2 }
  0x23   : > { %p1120_p1 = pneg %p1119_p10 }
  0x25   : > { %p1127_p0 = pnand %p1126_p12, %p1120_p1 }
  0x27   : > { %1130 = shalt.err (!%p1127_p0)
}
  0x28   : > { %s1296_s23 = smov 64   ;;  %s1297_s27 = smov 4  }
  0x29   : > { %1006 = dma.hbm_to_vmem [thread:$0]  (!%p1384_p11), %s1617_s1, 1024, %s1377_s28, [#allocation6], %s1296_s23, %s1296_s23, %s1297_s27  }
  0x2a   : > { %s1131_s11 = scalar_lea.hbm %s1618_s2, 1024 }
  0x2b   : > { %p1132_p1 = scmp.ne.s32.totalorder %s1618_s2, %s1131_s11  ;;  %p1138_p10 = scmp.lt.u32.totalorder %s1131_s11, %s1618_s2 }
  0x2d   : > { %p1134_p2 = pnand %p1132_p1, %p1400_p13 }
  0x2f   : > { %p1135_p6 = pneg %p1134_p2 }
  0x31   : > { %p1140_p3 = pnand %p1138_p10, %p1135_p6 }
  0x33   : > { %1143 = shalt.err (!%p1140_p3)
}
  0x34   : > { %s1144_s28 = scalar_lea.vmem %s1388_s6, 1024  ;;  %p1152_p12 = scmp.lt.s32.totalorder %s1388_s6, %s1388_s6 }
  0x35   : > { %p1145_p5 = scmp.ne.s32.totalorder %s1388_s6, %s1144_s28  ;;  %p1153_p0 = scmp.lt.s32.totalorder %s1144_s28, %s1144_s28 }
  0x37   : > { %p1147_p7 = pnand %p1145_p5, %p1400_p13  ;;  %p1154_p1 = por %p1153_p0, %p1152_p12 }
  0x39   : > { %p1148_p9 = pneg %p1147_p7 }
  0x3b   : > { %p1155_p2 = pnand %p1154_p1, %p1148_p9 }
  0x3d   : > { %1158 = shalt.err (!%p1155_p2)
}
  0x3e   : > { %1009 = dma.hbm_to_vmem [thread:$0]  (!%p1384_p11), %s1618_s2, 1024, %s1388_s6, [#allocation6], %s1296_s23, %s1296_s23, %s1297_s27  }
  0x3f   : > { %s1159_s10 = scalar_lea.hbm %s1619_s3, 1024 }
  0x40   : > { %p1160_p6 = scmp.ne.s32.totalorder %s1619_s3, %s1159_s10  ;;  %p1166_p5 = scmp.lt.u32.totalorder %s1159_s10, %s1619_s3 }
  0x42   : > { %p1162_p10 = pnand %p1160_p6, %p1400_p13 }
  0x44   : > { %p1163_p3 = pneg %p1162_p10 }
  0x46   : > { %p1168_p7 = pnand %p1166_p5, %p1163_p3 }
  0x48   : > { %1171 = shalt.err (!%p1168_p7)
}
  0x49   : > { %s1172_s16 = scalar_lea.vmem %s203_s8, 1024  ;;  %p1180_p1 = scmp.lt.s32.totalorder %s203_s8, %s203_s8 }
  0x4a   : > { %p1173_p9 = scmp.ne.s32.totalorder %s203_s8, %s1172_s16  ;;  %p1181_p2 = scmp.lt.s32.totalorder %s1172_s16, %s1172_s16 }
  0x4c   : > { %p1175_p12 = pnand %p1173_p9, %p1400_p13  ;;  %p1182_p4 = por %p1181_p2, %p1180_p1 }
  0x4e   : > { %p1176_p0 = pneg %p1175_p12 }
  0x50   : > { %p1183_p8 = pnand %p1182_p4, %p1176_p0 }
  0x52   : > { %1186 = shalt.err (!%p1183_p8)
}
  0x53   : > { %1012 = dma.hbm_to_vmem [thread:$0]  (!%p1384_p11), %s1619_s3, 1024, %s203_s8, [#allocation9], %s1296_s23, %s1296_s23, %s1297_s27  }
  0x54   : > { %s1473_s14 = sadd.s32 1, %s1291_s21   ;;  %s30_s17 = sadd.s32 1, %s1287_s20 }
  0x55   : > { %s27_s29 = ssub.s32 %s1291_s21, %s1473_s14  ;;  %p37_p8 = scmp.ne.s32.totalorder %s1287_s20, %s1283_s19 }
  0x56   : > { %p28_p4 = scmp.eq.s32.totalorder %s27_s29, 0  ;;  %p38_p13 = scmp.eq.s32.totalorder %s1291_s21, 0 }
  0x57   : > { %p1024_p6 = scmp.lt.s32.totalorder %s1291_s21, 2  ;;  %p1630_p3 = scmp.eq.s32.totalorder %s1354_s22, 1 }
  0x58   : > { %s1483_s30 = scalar_select %p28_p4, %s1287_s20, %s30_s17  }
  0x59   : > { %p39_p10 = por %p38_p13, %p37_p8  ;;  %p1487_p5 = por %p1630_p3, %p37_p8 }
  0x5a   : > { %s219_s9 = sand.u32 1, %s1287_s20   ;;  %s895_s10 = sshll.u32 %s1291_s21, 8 }
  0x5b   : > { %s851_s8 = sshll.u32 %s219_s9, 4  ;;  %s1496_s13 = scalar_lea.hbm %s1616_s0, %s895_s10 }
  0x5c   : > { %s223_s15 = scalar_lea.vmem [#allocation2], %s851_s8  ;;  %p1498_p11 = pnand %p1024_p6, %p39_p10 }
  0x5d   : > { %s230_s16 = sshll.u32 %s223_s15, 4  ;;  %s1504_s28 = scalar_lea.sflag [#allocation3], %s219_s9  ;;  %s1502_s16 = int_to_ptr.vmem [resolvable:$true] %s230_s16 }
  0x5e   : > { %s1187_s29 = scalar_lea.hbm %s1496_s13, 256  ;;  %p1189_p9 = pneg %p1498_p11 }
  0x5f   : > { %p1188_p7 = scmp.ne.s32.totalorder %s1496_s13, %s1187_s29  ;;  %s1192_s8 = scalar_lea.hbm %s1616_s0, 512 }
  0x60   : > { %p1193_p1 = scmp.lt.u32.totalorder %s1496_s13, %s1616_s0  ;;  %p1194_p2 = scmp.lt.u32.totalorder %s1192_s8, %s1187_s29 }
  0x61   : > { %p1190_p12 = pnand %p1189_p9, %p1188_p7  ;;  %p1196_p8 = scmp.lt.u32.totalorder %s1187_s29, %s1496_s13 }
  0x62   : > { %p1195_p4 = por %p1194_p2, %p1193_p1 }
  0x63   : > { %p1191_p0 = pneg %p1190_p12 }
  0x64   : > { %p1197_p13 = por %p1196_p8, %p1195_p4 }
  0x66   : > { %p1198_p6 = pnand %p1197_p13, %p1191_p0 }
  0x68   : > { %1201 = shalt.err (!%p1198_p6)
}
  0x69   : > { %s1202_s9 = scalar_lea.vmem %s1502_s16, 256  ;;  %s1298_s15 = smov [#allocation2]  }
  0x6a   : > { %p1203_p10 = scmp.ne.s32.totalorder %s1502_s16, %s1202_s9  ;;  %s1207_s17 = sshll.u32 %s1298_s15, 4  ;;  %s1208_s17 = int_to_ptr.vmem [resolvable:$false] %s1207_s17 }
  0x6b   : > { %s1209_s10 = scalar_lea.vmem %s1208_s17, 512  ;;  %p1210_p12 = scmp.lt.s32.totalorder %s1502_s16, %s1208_s17 }
  0x6c   : > { %p1205_p3 = pnand %p1203_p10, %p1189_p9  ;;  %p1211_p1 = scmp.lt.s32.totalorder %s1209_s10, %s1202_s9 }
  0x6e   : > { %p1206_p7 = pneg %p1205_p3  ;;  %p1212_p2 = por %p1211_p1, %p1210_p12 }
  0x70   : > { %p1213_p4 = pnand %p1212_p2, %p1206_p7 }
  0x72   : > { %1216 = shalt.err (!%p1213_p4)
}
  0x73   : > { %1016 = dma.hbm_to_vmem [thread:$0]  (!%p1498_p11), %s1496_s13, 256, %s1502_s16, %s1504_s28, %s1296_s23, %s1296_s23, %s1297_s27  }
  0x74   : > { %p1633_p9 = scmp.ne.s32.totalorder %s1627_s26, 0 }
  0x75   : > { %s1538_s29 = sand.u32 (!%p1633_p9), 1, %s1283_s19   ;;  %p1634_p0 = scmp.ne.s32.totalorder (!%p1633_p9), %s1625_s24, 0 }
  0x76   : > { %242 = sbr.rel (%p1633_p9) target bundleno = 867 (0x363), region = 40  ;;  %s855_s8 = sshll.u32 (!%p1633_p9), %s1538_s29, 4 }
  0x77   : > { %s245_s11 = scalar_lea.sflag (!%p1633_p9), [#allocation3], %s1538_s29  ;;  %s1542_s12 = scalar_lea.vmem (!%p1633_p9), [#allocation2], %s855_s8 }
  0x7d   : > { %1262 = dma.done.wait (%p1634_p0), %s245_s11, 256  }
  0x7e   : > { %1264 = vsyncadd (%p1634_p0), %s245_s11, 4294967040  ;;  %p1635_p11 = scmp.eq.s32.totalorder %s1354_s22, 0 }
  0x80   : > { %1266 = dma.done.wait (%p1635_p11), [#allocation6], 2048   ;;  %p1636_p8 = pmov %p1635_p11 }
  0x82   : > { %1268 = vsyncadd (%p1636_p8), [#allocation6], 4294965248  ;;  %p1637_p13 = pmov %p1636_p8 }
  0x83   : > { %p1638_p6 = pmov %p1636_p8 }
  0x84   : > { %1270 = dma.done.wait (%p1637_p13), [#allocation9], 1024  }
  0x85   : > { %1272 = vsyncadd (%p1638_p6), [#allocation9], 4294966272  ;;  %v1069_v0 = vld [vmem:[#allocation5] sm:$0xff]   ;;  %v1070_v1 = vld [vmem:[#allocation5 + $0x8] sm:$0xff]   ;;  %v570_v54 = vlaneseq  ;;  %s859_s23 = sshll.u32 %s1538_s29, 5  ;;  %s896_s27 = sshll.u32 %s1354_s22, 9 }
  0x86   : > { %927 = vmatprep.subr.bf16.mxu0 %v1069_v0  ;;  %v1071_v2 = vld [vmem:[#allocation5 + $0x10] sm:$0xff]   ;;  %v1072_v3 = vld [vmem:[#allocation5 + $0x18] sm:$0xff]   ;;  %v1079_v5 = vld [vmem:[#allocation7] sm:$0xff]   ;;  %s286_s13 = scalar_lea.vmem [#allocation10], %s859_s23  ;;  %s1568_s22 = scalar_lea.hbm %s1621_s5, %s896_s27 }
  0x87   : > { %928 = vmatpush3.bf16.msra.mxu0 %v1069_v0  ;;  %v1077_v4 = vld [vmem:[%s1542_s12] sm:$0xff]   ;;  %v1080_v6 = vld [vmem:[#allocation7 + $0x8] sm:$0xff]   ;;  %947 = vmatprep.subr.bf16.mxu1 %v1079_v5  ;;  %v1082_v10 = vld [vmem:[#allocation7 + $0x18] sm:$0xff]   ;;  %v571_v55 = vshrl.u32 %v570_v54, 7  ;;  %s743_s16 = sshll.u32 %s286_s13, 4  ;;  %s730_s9 = scalar_lea.sflag [#allocation4], %s1538_s29  ;;  %s1570_s16 = int_to_ptr.vmem [resolvable:$true] %s743_s16 }
  0x88   : > { %929 = vmatprep.subr.bf16.mxu0 %v1070_v1  ;;  %943 = vmatprep.mubr.bf16.mxu0 %v1077_v4  ;;  %v1073_v7 = vld [vmem:[#allocation5 + $0x20] sm:$0xff]   ;;  %v1081_v8 = vld [vmem:[#allocation7 + $0x10] sm:$0xff]   ;;  %v1074_v9 = vld [vmem:[#allocation5 + $0x28] sm:$0xff]   ;;  %s1217_s15 = scalar_lea.vmem %s1570_s16, 512  ;;  %s1300_s17 = smov [#allocation10]  }
  0x89   : > { %948 = vmatpush3.bf16.msra.mxu1 %v1079_v5  ;;  %v1075_v11 = vld [vmem:[#allocation5 + $0x30] sm:$0xff]   ;;  %v1083_v12 = vld [vmem:[#allocation7 + $0x20] sm:$0xff]   ;;  %v1076_v13 = vld [vmem:[#allocation5 + $0x38] sm:$0xff]   ;;  %v572_v56 = vsub.s32 0, %v571_v55  ;;  %p1218_p10 = scmp.ne.s32.totalorder %s1570_s16, %s1217_s15  ;;  %s1221_s10 = sshll.u32 %s1300_s17, 4  ;;  %s1222_s10 = int_to_ptr.vmem [resolvable:$false] %s1221_s10 }
  0x8a   : > { %949 = vmatprep.subr.bf16.mxu1 %v1080_v6  ;;  %v1084_v14 = vld [vmem:[#allocation7 + $0x28] sm:$0xff]   ;;  %v1085_v16 = vld [vmem:[#allocation7 + $0x30] sm:$0xff]   ;;  %v1086_v17 = vld [vmem:[#allocation7 + $0x38] sm:$0xff]   ;;  %s1223_s8 = scalar_lea.vmem %s1222_s10, 1024  ;;  %p1224_p12 = scmp.lt.s32.totalorder %s1570_s16, %s1222_s10 }
  0x8b   : > { %930 = vmatpush3.bf16.msra.mxu0 %v1070_v1  ;;  %v1078_v15 = vld [vmem:[%s1542_s12 + $0x8] sm:$0xff]   ;;  %v1087_v18 = vld [vmem:[#allocation8] sm:$0xff]   ;;  %v1089_v20 = vld [vmem:[#allocation8 + $0x10] sm:$0xff]   ;;  %p1219_p3 = pnand %p1218_p10, %p1487_p5  ;;  %p1225_p1 = scmp.lt.s32.totalorder %s1223_s8, %s1217_s15 }
  0x8c   : > { %931 = vmatprep.subr.bf16.mxu0 %v1071_v2  ;;  %v1088_v19 = vld [vmem:[#allocation8 + $0x8] sm:$0xff]   ;;  %v1090_v21 = vld [vmem:[#allocation8 + $0x18] sm:$0xff]   ;;  %v1091_v22 = vld [vmem:[#allocation8 + $0x20] sm:$0xff]  }
  0x8d   : > { %950 = vmatpush3.bf16.msra.mxu1 %v1080_v6  ;;  %v1092_v23 = vld [vmem:[#allocation8 + $0x28] sm:$0xff]   ;;  %v1093_v38 = vld [vmem:[#allocation8 + $0x30] sm:$0xff]   ;;  %v1094_v39 = vld [vmem:[#allocation8 + $0x38] sm:$0xff]   ;;  %p1220_p7 = pneg %p1219_p3  ;;  %p1226_p2 = por %p1225_p1, %p1224_p12 }
  0x8e   : > { %951 = vmatprep.subr.bf16.mxu1 %v1081_v8  ;;  %v568_v57 = vld [vmem:[%s1620_s4] sm:$0x7] }
  0x8f   : > { %932 = vmatpush3.bf16.msra.mxu0 %v1071_v2  ;;  %v573_v58 = vrot.slane %v568_v57, %v572_v56  ;;  %vm569_vm0 = vcmp.gt.f32.partialorder %v568_v57, 0.5  ;;  %p1227_p4 = pnand %p1226_p2, %p1220_p7 }
  0x90   : > { %933 = vmatprep.subr.bf16.mxu0 %v1072_v3 }
  0x91   : > { %952 = vmatpush3.bf16.msra.mxu1 %v1081_v8 }
  0x92   : > { %953 = vmatprep.subr.bf16.mxu1 %v1082_v10 }
  0x93   : > { %934 = vmatpush3.bf16.msra.mxu0 %v1072_v3 }
  0x94   : > { %935 = vmatprep.subr.bf16.mxu0 %v1073_v7 }
  0x95   : > { %954 = vmatpush3.bf16.msra.mxu1 %v1082_v10 }
  0x96   : > { %955 = vmatprep.subr.bf16.mxu1 %v1083_v12 }
  0x97   : > { %936 = vmatpush3.bf16.msra.mxu0 %v1073_v7 }
  0x98   : > { %937 = vmatprep.subr.bf16.mxu0 %v1074_v9 }
  0x99   : > { %956 = vmatpush3.bf16.msra.mxu1 %v1083_v12 }
  0x9a   : > { %957 = vmatprep.subr.bf16.mxu1 %v1084_v14 }
  0x9b   : > { %938 = vmatpush3.bf16.msra.mxu0 %v1074_v9 }
  0x9c   : > { %939 = vmatprep.subr.bf16.mxu0 %v1075_v11 }
  0x9d   : > { %958 = vmatpush3.bf16.msra.mxu1 %v1084_v14  ;;  %v1299_v14 = vmov 0  }
  0x9e   : > { %959 = vmatprep.subr.bf16.mxu1 %v1085_v16 }
  0x9f   : > { %940 = vmatpush3.bf16.msra.mxu0 %v1075_v11  ;;  %v718_v11 = vsub.s32 2, %v571_v55 }
  0xa0   : > { %941 = vmatprep.subr.bf16.mxu0 %v1076_v13 }
  0xa1   : > { %960 = vmatpush3.bf16.msra.mxu1 %v1085_v16 }
  0xa2   : > { %961 = vmatprep.subr.bf16.mxu1 %v1086_v17 }
  0xa3   : > { %942 = vmatpush3.bf16.msra.mxu0 %v1076_v13  ;;  %v705_v13 = vsub.s32 1, %v571_v55 }
  0xa4   : > { %967 = vmatprep.subr.bf16.mxu0 %v1087_v18 }
  0xa5   : > { %962 = vmatpush3.bf16.msra.mxu1 %v1086_v17 }
  0xa6   : > { %944 = vmatmul.mubr.bf16.vlgmr.msra.gmra.mrb[0].mxu0 %v1078_v15  ;;  %v715_v15 = vsel %vm569_vm0, 1, %v1299_v14 }
  0xa7   : > { %968 = vmatpush3.bf16.msra.mxu0 %v1087_v18 }
  0xa8   : > { %969 = vmatprep.subr.bf16.mxu0 %v1088_v19 }
  0xab   : > { %970 = vmatpush3.bf16.msra.mxu0 %v1088_v19 }
  0xac   : > { %971 = vmatprep.subr.bf16.mxu0 %v1089_v20 }
  0xaf   : > { %972 = vmatpush3.bf16.msra.mxu0 %v1089_v20 }
  0xb0   : > { %973 = vmatprep.subr.bf16.mxu0 %v1090_v21 }
  0xb3   : > { %974 = vmatpush3.bf16.msra.mxu0 %v1090_v21 }
  0xb4   : > { %975 = vmatprep.subr.bf16.mxu0 %v1091_v22 }
  0xb7   : > { %976 = vmatpush3.bf16.msra.mxu0 %v1091_v22  ;;  %v719_v22 = vrot.slane %v715_v15, %v718_v11 }
  0xb8   : > { %977 = vmatprep.subr.bf16.mxu0 %v1092_v23 }
  0xb9   : > { %vm720_vm4 = vcmp.eq.s32.totalorder %v719_v22, 1 }
  0xbb   : > { %978 = vmatpush3.bf16.msra.mxu0 %v1092_v23 }
  0xbc   : > { %979 = vmatprep.subr.bf16.mxu0 %v1093_v38 }
  0xbf   : > { %980 = vmatpush3.bf16.msra.mxu0 %v1093_v38 }
  0xc0   : > { %981 = vmatprep.subr.bf16.mxu0 %v1094_v39 }
  0xc3   : > { %982 = vmatpush3.bf16.msra.mxu0 %v1094_v39 }
 0x179   : > { %v945_v24 = vpop.f32.mrb[0].mxu0 }
 0x17a   : > { %v421_v25 = vmax.f32 %v945_v24, 0.0  ;;  %v404_v26 = vpop.f32.mrb[1].mxu0  ;;  %v706_v24 = vrot.slane %v568_v57, %v705_v13 }
 0x17b   : > { %v419_v27 = vmax.f32 %v404_v26, 0.0  ;;  %v946_v28 = vpop.f32.mrb[2].mxu0 }
 0x17c   : > { %v422_v29 = vmax.f32 %v946_v28, 0.0  ;;  %v407_v30 = vpop.f32.mrb[3].mxu0  ;;  %v425_v32 = vmin.f32 %v421_v25, 6.0 }
 0x17d   : > { %v420_v31 = vmax.f32 %v407_v30, 0.0  ;;  %v423_v34 = vmin.f32 %v419_v27, 6.0 }
 0x17e   : > { %v426_v33 = vmin.f32 %v422_v29, 6.0 }
 0x17f   : > { %v424_v35 = vmin.f32 %v420_v31, 6.0 }
 0x180   : > { %v428_v36 = vpack.c.bf16 %v426_v33, %v425_v32 }
 0x181   : > { %v427_v37 = vpack.c.bf16 %v424_v35, %v423_v34 }
 0x183   : > { %963 = vmatprep.mubr.bf16.mxu1 %v427_v37 }
 0x184   : > { %964 = vmatmul.mubr.bf16.vlgmr.msra.gmra.mrb[0].mxu1 %v428_v36 }
 0x257   : > { %v965_v40 = vpop.f32.mrb[0].mxu1 }
 0x258   : > { %v544_v41 = vmax.f32 %v965_v40, 0.0  ;;  %v527_v42 = vpop.f32.mrb[1].mxu1 }
 0x259   : > { %v542_v43 = vmax.f32 %v527_v42, 0.0  ;;  %v966_v44 = vpop.f32.mrb[2].mxu1 }
 0x25a   : > { %v545_v45 = vmax.f32 %v966_v44, 0.0  ;;  %v530_v46 = vpop.f32.mrb[3].mxu1  ;;  %v548_v48 = vmin.f32 %v544_v41, 6.0 }
 0x25b   : > { %v543_v47 = vmax.f32 %v530_v46, 0.0  ;;  %v546_v50 = vmin.f32 %v542_v43, 6.0 }
 0x25c   : > { %v549_v49 = vmin.f32 %v545_v45, 6.0 }
 0x25d   : > { %v547_v51 = vmin.f32 %v543_v47, 6.0 }
 0x25e   : > { %v551_v52 = vpack.c.bf16 %v549_v49, %v548_v48 }
 0x25f   : > { %v550_v53 = vpack.c.bf16 %v547_v51, %v546_v50 }
 0x261   : > { %983 = vmatprep.mubr.bf16.mxu0 %v550_v53 }
 0x262   : > { %984 = vmatmul.mubr.bf16.vlgmr.msra.gmra.mrb[4].mxu0 %v551_v52 }
 0x335   : > { %v985_v59 = vpop.f32.mrb[4].mxu0 }
 0x336   : > { %v665_v60 = vadd.f32 %v985_v59, %v573_v58  ;;  %v656_v61 = vpop.f32.mrb[5].mxu0 }
 0x337   : > { %v657_v62 = vadd.f32 %v656_v61, %v573_v58  ;;  %v986_v63 = vpop.f32.mrb[6].mxu0 }
 0x338   : > { %v677_v0 = vmin.f32 %v665_v60, 0.0  ;;  %v668_v1 = vadd.f32 %v986_v63, %v573_v58  ;;  %v659_v2 = vpop.f32.mrb[7].mxu0  ;;  %vm673_vm1 = vcmp.gt.f32.partialorder %v665_v60, 0.0  ;;  %v713_v35 = vmul.f32 0.001, %v665_v60 }
 0x339   : > { %v675_v3 = vmin.f32 %v657_v62, 0.0  ;;  %v660_v4 = vadd.f32 %v659_v2, %v573_v58  ;;  %vm671_vm2 = vcmp.gt.f32.partialorder %v657_v62, 0.0  ;;  %v711_v39 = vmul.f32 0.001, %v657_v62 }
 0x33a   : > { %v683_v5 = vmul.f32 1.442695, %v677_v0  ;;  %v678_v6 = vmin.f32 %v668_v1, 0.0  ;;  %vm674_vm3 = vcmp.gt.f32.partialorder %v668_v1, 0.0  ;;  %v714_v43 = vmul.f32 0.001, %v668_v1 }
 0x33b   : > { %v679_v7 = vmul.f32 1.442695, %v675_v3  ;;  %v676_v8 = vmin.f32 %v660_v4, 0.0  ;;  %vm672_vm5 = vcmp.gt.f32.partialorder %v660_v4, 0.0  ;;  %v712_v46 = vmul.f32 0.001, %v660_v4 }
 0x33c   : > { %1095 = vpow2.f32 %v683_v5  ;;  %v685_v9 = vmul.f32 1.442695, %v678_v6 }
 0x33d   : > { %1097 = vpow2.f32 %v679_v7  ;;  %v681_v10 = vmul.f32 1.442695, %v676_v8 }
 0x33e   : > { %1099 = vpow2.f32 %v685_v9 }
 0x33f   : > { %1101 = vpow2.f32 %v681_v10 }
 0x346   : > { %v1096_v12 = vpop.eup %1095 }
 0x347   : > { %v1098_v16 = vpop.eup %1097  ;;  %v888_v17 = vadd.f32 -1.0, %v1096_v12 }
 0x348   : > { %v1100_v18 = vpop.eup %1099  ;;  %v886_v19 = vadd.f32 -1.0, %v1098_v16 }
 0x349   : > { %v1102_v20 = vpop.eup %1101  ;;  %v693_v21 = vmul.f32 1.6732632, %v888_v17  ;;  %v889_v23 = vadd.f32 -1.0, %v1100_v18 }
 0x34a   : > { %v691_v25 = vmul.f32 1.6732632, %v886_v19  ;;  %v887_v26 = vadd.f32 -1.0, %v1102_v20 }
 0x34b   : > { %v697_v27 = vsel %vm673_vm1, %v665_v60, %v693_v21  ;;  %v694_v28 = vmul.f32 1.6732632, %v889_v23 }
 0x34c   : > { %v701_v29 = vmul.f32 1.050701, %v697_v27  ;;  %v695_v30 = vsel %vm671_vm2, %v657_v62, %v691_v25  ;;  %v692_v31 = vmul.f32 1.6732632, %v887_v26 }
 0x34d   : > { %v699_v32 = vmul.f32 1.050701, %v695_v30  ;;  %v698_v33 = vsel %vm674_vm3, %v668_v1, %v694_v28 }
 0x34e   : > { %v709_v34 = vadd.f32 %v706_v24, %v701_v29  ;;  %v702_v36 = vmul.f32 1.050701, %v698_v33  ;;  %v696_v37 = vsel %vm672_vm5, %v660_v4, %v692_v31 }
 0x34f   : > { %v707_v38 = vadd.f32 %v706_v24, %v699_v32  ;;  %v700_v40 = vmul.f32 1.050701, %v696_v37 }
 0x350   : > { %v723_v41 = vsel %vm720_vm4, %v709_v34, %v713_v35  ;;  %v710_v42 = vadd.f32 %v706_v24, %v702_v36 }
 0x351   : > { %727 = vst [vmem:[%s286_s13 + $0x10] sm:$0xff] %v723_v41  ;;  %v721_v44 = vsel %vm720_vm4, %v707_v38, %v711_v39  ;;  %v708_v45 = vadd.f32 %v706_v24, %v700_v40 }
 0x352   : > { %725 = vst [vmem:[%s286_s13] sm:$0xff] %v721_v44  ;;  %v724_v47 = vsel %vm720_vm4, %v710_v42, %v714_v43 }
 0x353   : > { %728 = vst [vmem:[%s286_s13 + $0x18] sm:$0xff] %v724_v47  ;;  %v722_v48 = vsel %vm720_vm4, %v708_v45, %v712_v46 }
 0x354   : > { %726 = vst [vmem:[%s286_s13 + $0x8] sm:$0xff] %v722_v48 }
 0x355   : > { %1230 = shalt.err (!%p1227_p4)
}
 0x356   : > { %s1231_s11 = scalar_lea.hbm %s1568_s22, 512  ;;  %s1235_s26 = scalar_lea.hbm %s1621_s5, 1024 }
 0x357   : > { %p1232_p9 = scmp.ne.s32.totalorder %s1568_s22, %s1231_s11  ;;  %p1236_p8 = scmp.lt.u32.totalorder %s1568_s22, %s1621_s5 }
 0x358   : > { %p1237_p13 = scmp.lt.u32.totalorder %s1235_s26, %s1231_s11  ;;  %p1239_p10 = scmp.lt.u32.totalorder %s1231_s11, %s1568_s22 }
 0x359   : > { %p1233_p0 = pnand %p1232_p9, %p1487_p5 }
 0x35a   : > { %p1238_p6 = por %p1237_p13, %p1236_p8 }
 0x35b   : > { %p1234_p11 = pneg %p1233_p0 }
 0x35c   : > { %p1240_p3 = por %p1239_p10, %p1238_p6 }
 0x35e   : > { %p1241_p7 = pnand %p1240_p3, %p1234_p11 }
 0x360   : > { %1244 = shalt.err (!%p1241_p7)
}
 0x361   : > { %s1301_s13 = smov 128   ;;  %s1302_s6 = smov 8  }
 0x362   : > { %1001 = dma.vmem_to_hbm [thread:$0]  (%p1487_p5), %s1570_s16, 512, %s1568_s22, %s730_s9, %s1301_s13, %s1301_s13, %s1302_s6  }
 0x363 PF: > { %s758_s28 = sand.u32 1, %s1279_s18   ;;  %p1639_p12 = scmp.ne.s32.totalorder %s1626_s25, 0 }
 0x364   : > { %p1640_p1 = scmp.ge.s32.totalorder %s1291_s21, 2  ;;  %s759_s15 = scalar_lea.sflag [#allocation4], %s758_s28 }
 0x366   : > { %p1018_p2 = pnand %p1640_p1, %p1639_p12 }
 0x368   : > { %1274 = dma.done.wait (!%p1018_p2), %s759_s15, 512  }
 0x369   : > { %1276 = vsyncadd (!%p1018_p2), %s759_s15, 4294966784  ;;  %p20_p4 = scmp.ge.s32.totalorder %s1473_s14, 4   ;;  %s1641_s18 = smov %s1283_s19 }
 0x36a   : > { %s1642_s19 = smov %s1287_s20  ;;  %s1643_s20 = smov %s1483_s30 }
 0x36b   : > { %s1644_s21 = smov %s1473_s14  ;;  %22 = sbr.rel (!%p20_p4) target bundleno = 7 (0x7), region = 97 }
 0x372   :  { %764 = vsyncpa [#allocation3], 1 }
 0x373   :  { %766 = vsyncpa [#allocation3 + $0x1], 1 }
 0x374   :  { %767 = vsyncpa [#allocation6], 1 }
 0x375   :  { %768 = vsyncpa [#allocation9], 1 }
 0x376   :  { %769 = vsyncpa [#allocation4], 1 }
 0x377   :  { %771 = vsyncpa [#allocation4 + $0x1], 1 }

</bundles_post_ra>
